<compile_context>
chip_gen: v5e
topology: v5e:2x2
jax: 0.10.0
libtpu: 0.0.40
codegen_flags: <defaults>
</compile_context>

<pallas_src>
import jax
import jax.numpy as jnp
from jax.experimental import pallas as pl
from jax.experimental.pallas import tpu as pltpu

LANE = 128


def _round_up(x, m):
    return (x + m - 1) // m * m


# ----------------------------- Pallas kernel --------------------------------
def _critic_mlp_kernel(x_ref, w1_ref, b1_ref, w2_ref, b2_ref, w3_ref, b3_ref,
                       q_ref):
    """Fused 3-layer Critic MLP on one lane-dense batch tile.

    x_ref : [TB, K_pad]   packed (state||action) activations, zero lane-padded
    w1_ref: [K_pad, H_pad]  w2_ref: [H_sub, H_pad]  w3_ref: [1, H_pad]
    b1/b2 : [1, H_pad] (f32)   b3: scalar in SMEM
    q_ref : [1, TB]  lane-dense output row for this batch tile
    """
    # ---- Layer 1: one full-width MXU matmul (f32 accumulation) -------------
    h1 = jnp.dot(x_ref[...], w1_ref[...], preferred_element_type=jnp.float32)
    h1 = jnp.maximum(h1 + b1_ref[...], 0.0)

    # ---- Layer 2: contract only over the true hidden width -----------------
    h_sub = w2_ref.shape[0]
    h2 = jnp.dot(h1[:, :h_sub].astype(w2_ref.dtype), w2_ref[...],
                 preferred_element_type=jnp.float32)
    h2 = jnp.maximum(h2 + b2_ref[...], 0.0)

    # ---- Layer 3: H -> 1 as a lane reduction (VPU/XLU), bias from SMEM -----
    q = jnp.sum(h2 * w3_ref[...], axis=-1) + b3_ref[0]
    q_ref[...] = q.reshape(1, -1).astype(q_ref.dtype)


# ----------------------------- Forward wrapper -------------------------------
def _choose_batch_tile(B):
    """<=1024 rows: one tile. Larger: split so the grid has >=2 steps (v7x
    2-TC sharding) and cap at 2048 rows (~6 MiB working set, fits v5e's
    16 MiB scoped-VMEM default with headroom)."""
    if B <= 1024:
        return B
    return min(2048, _round_up((B + 1) // 2, 8))


def _critic_forward_impl(s, a, prepared):
    """s: [n_agents, B, n_state]  a: [n_agents, B, n_action] -> Q: [B, 1]."""
    w1p, b1p, w2p, b2p, w3r, b3 = prepared
    n_agents, B, n_state = s.shape
    n_action = a.shape[2]
    k_pad, h_pad = w1p.shape
    mm_dtype = w1p.dtype

    # Pack the torch glue (transpose/reshape/concat) into ONE lane-dense
    # [B, K_pad] activation inside this jit; padding columns are zero so the
    # padded W1 rows contribute nothing.
    s_flat = jnp.transpose(s, (1, 0, 2)).reshape(B, n_agents * n_state)
    a_flat = jnp.transpose(a, (1, 0, 2)).reshape(B, n_agents * n_action)
    x = jnp.concatenate([s_flat, a_flat], axis=1)
    x = jnp.pad(x, ((0, 0), (0, k_pad - x.shape[1]))).astype(mm_dtype)

    tb = _choose_batch_tile(B)
    num_tiles = pl.cdiv(B, tb)

    const = lambda shape: pl.BlockSpec(shape, lambda i, s=shape: (0,) * len(s))

    q = pl.pallas_call(
        _critic_mlp_kernel,
        out_shape=jax.ShapeDtypeStruct((num_tiles, tb), jnp.float32),
        grid=(num_tiles,),
        in_specs=[
            pl.BlockSpec((tb, k_pad), lambda i: (i, 0)),         # packed x
            const(w1p.shape),                                    # W1 [K_pad,H_pad]
            const(b1p.shape),                                    # b1
            const(w2p.shape),                                    # W2 [H_sub,H_pad]
            const(b2p.shape),                                    # b2
            const(w3r.shape),                                    # W3 lane row
            pl.BlockSpec(memory_space=pltpu.MemorySpace.SMEM),   # b3 scalar
        ],
        out_specs=pl.BlockSpec((1, tb), lambda i: (i, 0)),       # lane-dense out
        compiler_params=pltpu.CompilerParams(
            dimension_semantics=("parallel",)),   # batch tiles shard across TCs
    )(x, w1p, b1p, w2p, b2p, w3r, b3)

    # (num_tiles, tb) -> drop any padded tail rows of the last tile -> (B, 1)
    return q.reshape(-1)[:B].reshape(B, 1)


critic_forward = jax.jit(_critic_forward_impl)


# ----------------------------- Parameter init / prep -------------------------
def init_critic_params(key, in_dim, hid_dim):
    """Torch-Linear-like uniform init; weights stored [in, out]."""
    ks = jax.random.split(key, 6)

    def uni(k, shape, fan_in):
        bound = 1.0 / jnp.sqrt(jnp.float32(fan_in))
        return jax.random.uniform(k, shape, jnp.float32, -bound, bound)

    w1 = uni(ks[0], (in_dim, hid_dim), in_dim)
    b1 = uni(ks[1], (hid_dim,), in_dim)
    w2 = uni(ks[2], (hid_dim, hid_dim), hid_dim)
    b2 = uni(ks[3], (hid_dim,), hid_dim)
    w3 = uni(ks[4], (hid_dim, 1), hid_dim)
    b3 = uni(ks[5], (1,), hid_dim)
    return (w1, b1, w2, b2, w3, b3)


def prepare_critic_params(params, matmul_dtype=jnp.float32):
    """One-time offline repack: zero-pad W1's contraction dim and the hidden
    lane dims to multiples of 128 (exact: padded inputs/hidden units are zero
    through ReLU and contribute nothing). W2 keeps its true contraction width
    (sublane-padded to 8). Matmul weights optionally stored in bf16 for
    v6e/v7x MXUs; biases and the layer-3 row stay f32."""
    w1, b1, w2, b2, w3, b3 = params
    in_dim, H = w1.shape
    k_pad = max(LANE, _round_up(in_dim, LANE))
    h_pad = max(LANE, _round_up(H, LANE))
    h_sub = _round_up(H, 8)

    w1p = jnp.pad(w1, ((0, k_pad - in_dim), (0, h_pad - H))).astype(matmul_dtype)
    b1p = jnp.pad(b1, (0, h_pad - H)).reshape(1, h_pad).astype(jnp.float32)
    w2p = jnp.pad(w2, ((0, h_sub - H), (0, h_pad - H))).astype(matmul_dtype)
    b2p = jnp.pad(b2, (0, h_pad - H)).reshape(1, h_pad).astype(jnp.float32)
    w3r = jnp.pad(w3[:, 0], (0, h_pad - H)).reshape(1, h_pad).astype(jnp.float32)
    b3p = b3.reshape(1).astype(jnp.float32)
    return (w1p, b1p, w2p, b2p, w3r, b3p)


# ----------------------------- Reference (plain JAX) -------------------------
def critic_forward_ref(s, a, params):
    w1, b1, w2, b2, w3, b3 = params
    _, B, _ = s.shape
    s_flat = jnp.transpose(s, (1, 0, 2)).reshape(B, -1)
    a_flat = jnp.transpose(a, (1, 0, 2)).reshape(B, -1)
    x = jnp.concatenate([s_flat, a_flat], axis=1)
    h1 = jnp.maximum(x @ w1 + b1, 0.0)
    h2 = jnp.maximum(h1 @ w2 + b2, 0.0)
    return h2 @ w3 + b3


# ----------------------------- Main -------------------------------------------
if __name__ == "__main__":
    n_agents = 3
    batch_size = 8
    n_state_shape = 16
    n_action_shape = 4
    hid_dim = 32
    in_dim = n_agents * n_state_shape + n_agents * n_action_shape  # 60

    key = jax.random.PRNGKey(0)
    k_s, k_a, k_p = jax.random.split(key, 3)

    s = jax.random.normal(k_s, (n_agents, batch_size, n_state_shape), jnp.float32)
    a = jax.random.normal(k_a, (n_agents, batch_size, n_action_shape), jnp.float32)

    params = init_critic_params(k_p, in_dim, hid_dim)
    q_ref = critic_forward_ref(s, a, params)

    # f32 matmul path: exact parity with the reference.
    prepared_f32 = prepare_critic_params(params, jnp.float32)
    q = jax.block_until_ready(critic_forward(s, a, prepared_f32))
    assert q.shape == (batch_size, 1), q.shape
    assert jnp.allclose(q, q_ref, atol=1e-5, rtol=1e-5), (q, q_ref)

    # bf16 MXU-operand path (v6e/v7x fast path); f32 accumulation/bias/ReLU.
    prepared_bf16 = prepare_critic_params(params, jnp.bfloat16)
    q_bf16 = jax.block_until_ready(critic_forward(s, a, prepared_bf16))
    assert q_bf16.shape == (batch_size, 1), q_bf16.shape
    assert jnp.allclose(q_bf16, q_ref, atol=5e-2, rtol=5e-2), (q_bf16, q_ref)

    print("KERNEL_OK")
</pallas_src>

<mosaic_0001>
module attributes {stable_mosaic.version = 11 : i64} {
  func.func @_critic_mlp_kernel(%arg0: i32, %arg1: memref<8x128xf32, #tpu.memory_space<vmem>>, %arg2: memref<128x128xf32, #tpu.memory_space<vmem>>, %arg3: memref<1x128xf32, #tpu.memory_space<vmem>>, %arg4: memref<32x128xf32, #tpu.memory_space<vmem>>, %arg5: memref<1x128xf32, #tpu.memory_space<vmem>>, %arg6: memref<1x128xf32, #tpu.memory_space<vmem>>, %arg7: memref<1xf32, #tpu.memory_space<smem>>, %arg8: memref<1x8xf32, #tpu.memory_space<vmem>>) attributes {dimension_semantics = [#tpu.dimension_semantics<parallel>], iteration_bounds = array<i64: 1>, scalar_prefetch = 0 : i64, scratch_operands = 0 : i64, tpu.core_type = #tpu.core_type<tc>, window_params = [{transform_indices = @transform_0, window_bounds = array<i64: 8, 128>}, {pipeline_mode = #tpu.pipeline_mode<synchronous>, transform_indices = @transform_1, window_bounds = array<i64: 128, 128>}, {pipeline_mode = #tpu.pipeline_mode<synchronous>, transform_indices = @transform_2, window_bounds = array<i64: 1, 128>}, {pipeline_mode = #tpu.pipeline_mode<synchronous>, transform_indices = @transform_3, window_bounds = array<i64: 32, 128>}, {pipeline_mode = #tpu.pipeline_mode<synchronous>, transform_indices = @transform_4, window_bounds = array<i64: 1, 128>}, {pipeline_mode = #tpu.pipeline_mode<synchronous>, transform_indices = @transform_5, window_bounds = array<i64: 1, 128>}, {transform_indices = @transform_6, window_bounds = array<i64: 1>}, {transform_indices = @transform_7, window_bounds = array<i64: 1, 8>}]} {
    %c0 = arith.constant 0 : index
    %c0_0 = arith.constant 0 : index
    %0 = vector.load %arg1[%c0, %c0_0] : memref<8x128xf32, #tpu.memory_space<vmem>>, vector<8x128xf32>
    %c0_1 = arith.constant 0 : index
    %c0_2 = arith.constant 0 : index
    %1 = vector.load %arg2[%c0_1, %c0_2] : memref<128x128xf32, #tpu.memory_space<vmem>>, vector<128x128xf32>
    %cst = arith.constant dense<0.000000e+00> : vector<8x128xf32>
    %2 = tpu.matmul %0, %1, %cst {dimension_numbers = #tpu.dot_dimension_numbers<[1], [0], [0], [1], [0, 0, 1, 1], [], []>} : vector<8x128xf32>, vector<128x128xf32>, vector<8x128xf32> -> vector<8x128xf32>
    %c0_3 = arith.constant 0 : index
    %c0_4 = arith.constant 0 : index
    %3 = vector.load %arg3[%c0_3, %c0_4] : memref<1x128xf32, #tpu.memory_space<vmem>>, vector<1x128xf32>
    %4 = vector.broadcast %3 : vector<1x128xf32> to vector<8x128xf32>
    %5 = arith.addf %2, %4 : vector<8x128xf32>
    %cst_5 = arith.constant 0.000000e+00 : f32
    %6 = vector.broadcast %cst_5 : f32 to vector<8x128xf32>
    %7 = arith.maximumf %5, %6 : vector<8x128xf32>
    %8 = vector.extract_strided_slice %7 {offsets = [0, 0], sizes = [8, 32], strides = [1, 1]} : vector<8x128xf32> to vector<8x32xf32>
    %c0_6 = arith.constant 0 : index
    %c0_7 = arith.constant 0 : index
    %9 = vector.load %arg4[%c0_6, %c0_7] : memref<32x128xf32, #tpu.memory_space<vmem>>, vector<32x128xf32>
    %cst_8 = arith.constant dense<0.000000e+00> : vector<8x128xf32>
    %10 = tpu.matmul %8, %9, %cst_8 {dimension_numbers = #tpu.dot_dimension_numbers<[1], [0], [0], [1], [0, 0, 1, 1], [], []>} : vector<8x32xf32>, vector<32x128xf32>, vector<8x128xf32> -> vector<8x128xf32>
    %c0_9 = arith.constant 0 : index
    %c0_10 = arith.constant 0 : index
    %11 = vector.load %arg5[%c0_9, %c0_10] : memref<1x128xf32, #tpu.memory_space<vmem>>, vector<1x128xf32>
    %12 = vector.broadcast %11 : vector<1x128xf32> to vector<8x128xf32>
    %13 = arith.addf %10, %12 : vector<8x128xf32>
    %cst_11 = arith.constant 0.000000e+00 : f32
    %14 = vector.broadcast %cst_11 : f32 to vector<8x128xf32>
    %15 = arith.maximumf %13, %14 : vector<8x128xf32>
    %c0_12 = arith.constant 0 : index
    %c0_13 = arith.constant 0 : index
    %16 = vector.load %arg6[%c0_12, %c0_13] : memref<1x128xf32, #tpu.memory_space<vmem>>, vector<1x128xf32>
    %17 = vector.broadcast %16 : vector<1x128xf32> to vector<8x128xf32>
    %18 = arith.mulf %15, %17 : vector<8x128xf32>
    %cst_14 = arith.constant dense<0.000000e+00> : vector<8xf32>
    %19 = vector.multi_reduction <add>, %18, %cst_14 [1] : vector<8x128xf32> to vector<8xf32>
    %c0_15 = arith.constant 0 : index
    %20 = memref.load %arg7[%c0_15] : memref<1xf32, #tpu.memory_space<smem>>
    %21 = vector.broadcast %20 : f32 to vector<8xf32>
    %22 = arith.addf %19, %21 : vector<8xf32>
    %23 = vector.shape_cast %22 : vector<8xf32> to vector<1x8xf32>
    %c0_16 = arith.constant 0 : index
    %c0_17 = arith.constant 0 : index
    %24 = vector.load %arg8[%c0_16, %c0_17] : memref<1x8xf32, #tpu.memory_space<vmem>>, vector<1x8xf32>
    tpu.vector_store %arg8[%c0_16, %c0_17], %23 {strides = array<i32>} : memref<1x8xf32, #tpu.memory_space<vmem>>, vector<1x8xf32>,
    return
  }
  func.func @transform_0(%arg0: i32) -> (i32, i32) {
    %c0_i32 = arith.constant 0 : i32
    %c0_i32_0 = arith.constant 0 : i32
    return %arg0, %c0_i32 : i32, i32
  }
  func.func @transform_1(%arg0: i32) -> (i32, i32) {
    %c0_i32 = arith.constant 0 : i32
    %c0_i32_0 = arith.constant 0 : i32
    %c0_i32_1 = arith.constant 0 : i32
    return %c0_i32, %c0_i32_0 : i32, i32
  }
  func.func @transform_2(%arg0: i32) -> (i32, i32) {
    %c0_i32 = arith.constant 0 : i32
    %c0_i32_0 = arith.constant 0 : i32
    %c0_i32_1 = arith.constant 0 : i32
    return %c0_i32, %c0_i32_0 : i32, i32
  }
  func.func @transform_3(%arg0: i32) -> (i32, i32) {
    %c0_i32 = arith.constant 0 : i32
    %c0_i32_0 = arith.constant 0 : i32
    %c0_i32_1 = arith.constant 0 : i32
    return %c0_i32, %c0_i32_0 : i32, i32
  }
  func.func @transform_4(%arg0: i32) -> (i32, i32) {
    %c0_i32 = arith.constant 0 : i32
    %c0_i32_0 = arith.constant 0 : i32
    %c0_i32_1 = arith.constant 0 : i32
    return %c0_i32, %c0_i32_0 : i32, i32
  }
  func.func @transform_5(%arg0: i32) -> (i32, i32) {
    %c0_i32 = arith.constant 0 : i32
    %c0_i32_0 = arith.constant 0 : i32
    %c0_i32_1 = arith.constant 0 : i32
    return %c0_i32, %c0_i32_0 : i32, i32
  }
  func.func @transform_6(%arg0: i32) -> i32 {
    %c0_i32 = arith.constant 0 : i32
    %c0_i32_0 = arith.constant 0 : i32
    return %c0_i32 : i32
  }
  func.func @transform_7(%arg0: i32) -> (i32, i32) {
    %c0_i32 = arith.constant 0 : i32
    %c0_i32_0 = arith.constant 0 : i32
    return %arg0, %c0_i32 : i32, i32
  }
}

</mosaic_0001>

<bundles_post_ra>
// kernel: _critic_forward_impl.1
= control target key start
LH: loop header
LB: loop body
LE: loop exit
PB: predicated region body
PF: predicated region fallthrough
CT: control target
= control target key end

     0   :  { %13 = vsyncpa [#allocation4], 0  ;;  %s290_s0 = inlined_call_operand.vmem [shape: f32[8,128], index: 0, kind: input, shape index: {}]   ;;  %s291_s1 = inlined_call_operand.hbm [shape: f32[128,128], index: 1, kind: input, shape index: {}]   ;;  %s292_s2 = inlined_call_operand.vmem [shape: f32[1,128], index: 2, kind: input, shape index: {}]   ;;  %s293_s3 = inlined_call_operand.vmem [shape: f32[32,128], index: 3, kind: input, shape index: {}]   ;;  %s294_s4 = inlined_call_operand.vmem [shape: f32[1,128], index: 4, kind: input, shape index: {}]   ;;  %s295_s5 = inlined_call_operand.vmem [shape: f32[1,128], index: 5, kind: input, shape index: {}]   ;;  %s296_s6 = inlined_call_operand.<no memory space> [shape: f32[1], index: 6, kind: input, shape index: {}]   ;;  %s297_s7 = inlined_call_operand.hbm [shape: f32[1,8], index: 7, kind: output, shape index: {}]  }
   0x1   :  { %14 = vsyncpa [#allocation5], 0  ;;  %s21_s26 = sshll.u32 %s291_s1, 4  ;;  %s213_s27 = smov [#allocation3]   ;;  %s22_s26 = int_to_ptr.hbm [resolvable:$true] %s21_s26 }
   0x2   :  { %s23_s28 = sshll.u32 %s213_s27, 4  ;;  %s214_s29 = smov 128   ;;  %s24_s28 = int_to_ptr.vmem [resolvable:$true] %s23_s28 }
   0x3   :  { %s215_s30 = smov 8  }
   0x4   :  { %29 = dma.hbm_to_vmem [thread:$0]  %s22_s26, 2048, %s24_s28, [#allocation4], %s214_s29, %s214_s29, %s215_s30  }
   0x5   :  { %209 = dma.done.wait [#allocation4], 2048  }
   0x6   :  { %210 = vsyncadd [#allocation4], 4294965248  ;;  %v60_v0 = vld [vmem:[#allocation3 + $0x78] sm:$0xff]  ;;  %v59_v1 = vld [vmem:[#allocation3 + $0x70] sm:$0xff]  ;;  %vm94_vm0 = vcmask 261120   ;;  %v130_v31 = vlaneseq  ;;  %v127_v32 = vstv %s296_s6  ;;  %s216_s22 = smov [#allocation6]  }
   0x7   :  { %65 = vmatpush.msra.mxu0 %v60_v0  ;;  %v58_v2 = vld [vmem:[#allocation3 + $0x68] sm:$0xff]  ;;  %v57_v3 = vld [vmem:[#allocation3 + $0x60] sm:$0xff]  ;;  %v89_v4 = vld [vmem:[%s293_s3 + $0x18] sm:$0xff]  ;;  %s141_s23 = sshll.u32 %s216_s22, 4  ;;  %s143_s25 = sshll.u32 %s297_s7, 4  ;;  %vm134_vm1 = vcmask 57344   ;;  %s142_s23 = int_to_ptr.vmem [resolvable:$true] %s141_s23  ;;  %s144_s25 = int_to_ptr.hbm [resolvable:$true] %s143_s25 }
   0x8   :  { %v56_v5 = vld [vmem:[#allocation3 + $0x58] sm:$0xff]  ;;  %110 = vmatpush.msra.mxu1 %v89_v4  ;;  %v55_v6 = vld [vmem:[#allocation3 + $0x50] sm:$0xff]  ;;  %v54_v7 = vld [vmem:[#allocation3 + $0x48] sm:$0xff]  ;;  %v131_v33 = vand.u32 127, %v130_v31 }
   0x9   :  { %66 = vmatpush.msra.mxu0 %v59_v1  ;;  %v53_v8 = vld [vmem:[#allocation3 + $0x40] sm:$0xff]  ;;  %v52_v9 = vld [vmem:[#allocation3 + $0x38] sm:$0xff]  ;;  %v51_v10 = vld [vmem:[#allocation3 + $0x30] sm:$0xff] }
   0xa   :  { %v50_v11 = vld [vmem:[#allocation3 + $0x28] sm:$0xff]  ;;  %v49_v12 = vld [vmem:[#allocation3 + $0x20] sm:$0xff]  ;;  %v48_v13 = vld [vmem:[#allocation3 + $0x18] sm:$0xff] }
   0xb   :  { %67 = vmatpush.msra.mxu0 %v58_v2  ;;  %v47_v14 = vld [vmem:[#allocation3 + $0x10] sm:$0xff]  ;;  %v46_v15 = vld [vmem:[#allocation3 + $0x8] sm:$0xff]  ;;  %v45_v16 = vld [vmem:[#allocation3] sm:$0xff] }
   0xc   :  { %v44_v17 = vld [vmem:[%s290_s0] sm:$0xff]  ;;  %v88_v18 = vld [vmem:[%s293_s3 + $0x10] sm:$0xff]  ;;  %v87_v19 = vld [vmem:[%s293_s3 + $0x8] sm:$0xff] }
   0xd   :  { %68 = vmatpush.msra.mxu0 %v57_v3  ;;  %111 = vmatpush.msra.mxu1 %v88_v18  ;;  %v86_v20 = vld [vmem:[%s293_s3] sm:$0xff] }
   0xe   :  { %v158_v21 = vld [vmem:[%s292_s2] ss:$0 sm:$0xff] }
   0xf   :  { %69 = vmatpush.msra.mxu0 %v56_v5  ;;  %112 = vmatpush.msra.mxu1 %v87_v19  ;;  %v159_v25 = vld [vmem:[%s294_s4] ss:$0 sm:$0xff] }
  0x10   :  { %v160_v28 = vld [vmem:[%s295_s5] ss:$0 sm:$0xff] }
  0x11   :  { %70 = vmatpush.msra.mxu0 %v55_v6  ;;  %113 = vmatpush.msra.mxu1 %v86_v20 }
  0x13   :  { %71 = vmatpush.msra.mxu0 %v54_v7 }
  0x15   :  { %72 = vmatpush.msra.mxu0 %v53_v8 }
  0x17   :  { %73 = vmatpush.msra.mxu0 %v52_v9 }
  0x19   :  { %74 = vmatpush.msra.mxu0 %v51_v10 }
  0x1b   :  { %75 = vmatpush.msra.mxu0 %v50_v11 }
  0x1d   :  { %76 = vmatpush.msra.mxu0 %v49_v12 }
  0x1f   :  { %77 = vmatpush.msra.mxu0 %v48_v13 }
  0x21   :  { %78 = vmatpush.msra.mxu0 %v47_v14 }
  0x23   :  { %79 = vmatpush.msra.mxu0 %v46_v15 }
  0x25   :  { %80 = vmatpush.msra.mxu0 %v45_v16 }
  0x26   :  { %81 = vmatmul.f32.vlgmr.msra.gmra.mxu0 %v44_v17 }
  0xa3   :  { %v82_v22 = vpop.f32.mrf.mxu0 }
  0xa4   :  { %v83_v23 = vadd.f32 %v158_v21, %v82_v22 }
  0xa6   :  { %v85_v24 = vmax.f32 %v83_v23, 0.0 }
  0xa8   :  { %153 = vmatmul.msk.f32.vlgmr.msra.gmra.mxu1 %vm94_vm0, %v85_v24 }
 0x125   :  { %v115_v26 = vpop.f32.mrf.mxu1 }
 0x126   :  { %v116_v27 = vadd.f32 %v159_v25, %v115_v26 }
 0x128   :  { %v118_v29 = vmax.f32 %v116_v27, 0.0 }
 0x12a   :  { %v123_v30 = vmul.f32 %v160_v28, %v118_v29 }
 0x12c   :  { %124 = vadd.xlane.f32.xlu0 %v123_v30 }
 0x19f   :  { %v125_v34 = vpop.xlane.xlu0 %124 }
 0x1a0   :  { %v128_v35 = vadd.f32 %v127_v32, %v125_v34 }
 0x1a2   :  { %v132_v36 = vperm.slane %v128_v35, %v131_v33 }
 0x1a4   :  { %135 = vst.msk [vmem:[#allocation6] sm:$0x1] %vm134_vm1, %v132_v36 }
 0x1a5   :  { %146 = dma.vmem_to_hbm [thread:$0]  %s142_s23, 16, %s144_s25, [#allocation5]  }
 0x1a6   :  { %211 = dma.done.wait [#allocation5], 16  }
 0x1a7   :  { %212 = vsyncadd [#allocation5], 4294967280 }
 0x1a8   :  { %151 = vsyncpa [#allocation4], 1 }
 0x1a9   :  { %152 = vsyncpa [#allocation5], 1 }

</bundles_post_ra>
